<compile_context>
chip_gen: v7x
topology: tpu7x:2x2x1
jax: 0.10.0
libtpu: 0.0.40
codegen_flags: <defaults>
</compile_context>

<pallas_src>
import jax
import jax.numpy as jnp
from jax.experimental import pallas as pl
from jax.experimental.pallas import tpu as pltpu


def _obd_output_kernel(x_ref, w_ref, b_ref, o_ref):
    # x_ref: (tb, D), w_ref: (D, C), b_ref: (1, C), o_ref: (tb, C)
    x = x_ref[...]
    w = w_ref[...]
    b = b_ref[...].astype(jnp.float32)
    # MXU matmul with f32 accumulation; bias + sigmoid in f32 (EUP/VPU slots
    # are free while the kernel is memory-bound).
    logits = jnp.dot(x, w, preferred_element_type=jnp.float32) + b
    o_ref[...] = jax.nn.sigmoid(logits).astype(o_ref.dtype)


def obd_output(x: jax.Array, w: jax.Array, b: jax.Array, *,
               block_b: int = 8192, input_dtype=None) -> jax.Array:
    """sigmoid(x @ w + b).

    x: (B, D), w: (D, C), b: (1, C)  ->  (B, C) float32.
    `input_dtype=jnp.bfloat16` casts x/w for halved HBM read traffic
    (accumulation / elementwise stay f32 inside the kernel).
    """
    B, D = x.shape
    D2, C = w.shape
    assert D == D2 and b.shape == (1, C)

    if input_dtype is not None:
        x = x.astype(input_dtype)
        w = w.astype(input_dtype)

    out_shape = jax.ShapeDtypeStruct((B, C), jnp.float32)

    if B <= block_b:
        # Small case: no grid, whole arrays resident in VMEM — avoids the
        # per-grid-step pipeline setup cost, and full-array blocks are exempt
        # from the (8, 128) divisibility rule (handles ragged B for free).
        return pl.pallas_call(
            _obd_output_kernel,
            out_shape=out_shape,
            in_specs=[
                pl.BlockSpec(memory_space=pltpu.MemorySpace.VMEM),
                pl.BlockSpec(memory_space=pltpu.MemorySpace.VMEM),
                pl.BlockSpec(memory_space=pltpu.MemorySpace.VMEM),
            ],
            out_specs=pl.BlockSpec(memory_space=pltpu.MemorySpace.VMEM),
        )(x, w, b)

    # Realistic batch: tile ONLY over B.  W/b use constant index_maps so they
    # are fetched once and stay VMEM-resident across the grid.  Ragged B is
    # handled by the edge block (no padded copy of x is materialized); the
    # last partial tile's junk rows are never written back.
    tb = block_b                       # multiple of 8 (sublane constraint)
    assert tb % 8 == 0
    num_tiles = pl.cdiv(B, tb)
    return pl.pallas_call(
        _obd_output_kernel,
        out_shape=out_shape,
        grid=(num_tiles,),
        in_specs=[
            pl.BlockSpec((tb, D), lambda i: (i, 0)),   # D == full dim (lane-exempt)
            pl.BlockSpec((D, C), lambda i: (0, 0)),    # resident weights
            pl.BlockSpec((1, C), lambda i: (0, 0)),    # resident bias
        ],
        out_specs=pl.BlockSpec((tb, C), lambda i: (i, 0)),  # true-width output
        compiler_params=pltpu.CompilerParams(
            dimension_semantics=("parallel",)),         # megacore batch sharding
    )(x, w, b)


def _reference(x, w, b):
    return jax.nn.sigmoid(x @ w + b)


if __name__ == "__main__":
    # Shapes consistent with the module's forward:
    #   batch=8, input_size=32, num_classes=5 -> 4 ordinal classifiers.
    batch = 8
    input_size = 32
    num_classes = 5
    C = num_classes - 1

    key = jax.random.PRNGKey(0)
    kx, kw, kb, kx2 = jax.random.split(key, 4)

    x = jax.random.normal(kx, (batch, input_size), dtype=jnp.float32)

    # Deterministic parameter init (emulates the stacked per-classifier
    # nn.Linear weights/biases; synthetic, not a checkpoint load).
    bound = 1.0 / jnp.sqrt(jnp.float32(input_size))
    w = jax.random.uniform(kw, (input_size, C), dtype=jnp.float32,
                           minval=-bound, maxval=bound)
    b = jax.random.uniform(kb, (1, C), dtype=jnp.float32,
                           minval=-bound, maxval=bound)

    # 1) Small case: single VMEM-resident call (no grid).
    out = obd_output(x, w, b)
    jax.block_until_ready(out)
    ref = _reference(x, w, b)
    assert out.shape == (batch, C)
    assert jnp.allclose(out, ref, atol=1e-5, rtol=1e-5)

    # 2) Ragged batch through the tiled path: force a small block so the grid
    #    has several tiles and the last tile is partial (exercises edge-block
    #    clamping: junk rows must not be written back).
    big_batch = 1029
    x_big = jax.random.normal(kx2, (big_batch, input_size), dtype=jnp.float32)
    out_big = obd_output(x_big, w, b, block_b=256)   # grid=(5,), last block ragged
    jax.block_until_ready(out_big)
    ref_big = _reference(x_big, w, b)
    assert out_big.shape == (big_batch, C)
    assert jnp.allclose(out_big, ref_big, atol=1e-5, rtol=1e-5)

    # 3) Same batch through the default (single large tile) path.
    out_big2 = obd_output(x_big, w, b)
    jax.block_until_ready(out_big2)
    assert jnp.allclose(out_big2, ref_big, atol=1e-5, rtol=1e-5)

    # 4) Optional bf16-input path (halved read traffic on v6e/v7x); looser
    #    tolerance since inputs are rounded to bf16 before the f32-accum dot.
    out_bf16 = obd_output(x_big, w, b, block_b=256, input_dtype=jnp.bfloat16)
    jax.block_until_ready(out_bf16)
    assert jnp.allclose(out_bf16, ref_big, atol=2e-2, rtol=2e-2)

    print("KERNEL_OK")
</pallas_src>

<mosaic_0001>
module attributes {stable_mosaic.version = 11 : i64} {
  func.func @_obd_output_kernel(%arg0: memref<8x32xf32, #tpu.memory_space<vmem>>, %arg1: memref<32x4xf32, #tpu.memory_space<vmem>>, %arg2: memref<1x4xf32, #tpu.memory_space<vmem>>, %arg3: memref<8x4xf32, #tpu.memory_space<vmem>>) attributes {dimension_semantics = [], scalar_prefetch = 0 : i64, scratch_operands = 0 : i64, tpu.core_type = #tpu.core_type<tc>} {
    %c0 = arith.constant 0 : index
    %c0_0 = arith.constant 0 : index
    %0 = vector.load %arg0[%c0, %c0_0] : memref<8x32xf32, #tpu.memory_space<vmem>>, vector<8x32xf32>
    %c0_1 = arith.constant 0 : index
    %c0_2 = arith.constant 0 : index
    %1 = vector.load %arg1[%c0_1, %c0_2] : memref<32x4xf32, #tpu.memory_space<vmem>>, vector<32x4xf32>
    %c0_3 = arith.constant 0 : index
    %c0_4 = arith.constant 0 : index
    %2 = vector.load %arg2[%c0_3, %c0_4] : memref<1x4xf32, #tpu.memory_space<vmem>>, vector<1x4xf32>
    %cst = arith.constant dense<0.000000e+00> : vector<8x4xf32>
    %3 = tpu.matmul %0, %1, %cst {dimension_numbers = #tpu.dot_dimension_numbers<[1], [0], [0], [1], [0, 0, 1, 1], [], []>} : vector<8x32xf32>, vector<32x4xf32>, vector<8x4xf32> -> vector<8x4xf32>
    %4 = vector.broadcast %2 : vector<1x4xf32> to vector<8x4xf32>
    %5 = arith.addf %3, %4 : vector<8x4xf32>
    %6 = arith.negf %5 : vector<8x4xf32>
    %7 = math.exp %6 : vector<8x4xf32>
    %cst_5 = arith.constant 1.000000e+00 : f32
    %8 = vector.broadcast %cst_5 : f32 to vector<8x4xf32>
    %9 = arith.addf %8, %7 : vector<8x4xf32>
    %10 = arith.divf %8, %9 : vector<8x4xf32>
    %c0_6 = arith.constant 0 : index
    %c0_7 = arith.constant 0 : index
    %11 = vector.load %arg3[%c0_6, %c0_7] : memref<8x4xf32, #tpu.memory_space<vmem>>, vector<8x4xf32>
    tpu.vector_store %arg3[%c0_6, %c0_7], %10 {strides = array<i32>} : memref<8x4xf32, #tpu.memory_space<vmem>>, vector<8x4xf32>,
    return
  }
}

</mosaic_0001>

<bundles_post_ra>
// kernel: tpu_custom_call.1
= control target key start
LH: loop header
LB: loop body
LE: loop exit
PB: predicated region body
PF: predicated region fallthrough
CT: control target
= control target key end

     0   :  { %v144_v0 = vmov 0.0|0.0   ;;  %vm145_vm0 = vmmov 0   ;;  %v146_v4 = vmov 0.0   ;;  %vm26_vm1 = vcmask 261120   ;;  %s188_s1 = inlined_call_operand.vmem [shape: f32[32,4], index: 1, kind: input, shape index: {}]   ;;  %s189_s0 = inlined_call_operand.vmem [shape: f32[8,32], index: 0, kind: input, shape index: {}]   ;;  %s190_s2 = inlined_call_operand.vmem [shape: f32[1,4], index: 2, kind: input, shape index: {}]   ;;  %s191_s3 = inlined_call_operand.vmem [shape: f32[8,4], index: 3, kind: output, shape index: {}]  }
   0x1   :  { %131 = vmatprep.subr.bf16.mxu0 %v144_v0  ;;  %v15_v1 = vld [vmem:[%s188_s1] sm:$0xff]  ;;  %v16_v2 = vld [vmem:[%s188_s1 + $0x8] sm:$0xff]  ;;  %v17_v3 = vld [vmem:[%s188_s1 + $0x10] sm:$0xff]  ;;  %128 = vmatprep.mubr.msk.f32.mxu0 %vm145_vm0, %v146_v4  ;;  %vm106_vm2 = vcmask 31744  }
   0x2   :  { %v132_v5 = vpack.c.bf16 %v16_v2, %v15_v1  ;;  %v18_v6 = vld [vmem:[%s188_s1 + $0x18] sm:$0xff]  ;;  %v14_v8 = vld [vmem:[%s189_s0] sm:$0xff] }
   0x3   :  { %v135_v7 = vpack.c.bf16 %v18_v6, %v17_v3  ;;  %v112_v9 = vld [vmem:[%s190_s2] ss:$0 sm:$0xff] }
   0x4   :  { %133 = vmatpush3.bf16.msra.mxu0 %v132_v5 }
   0x5   :  { %134 = vmatprep.subr.bf16.mxu0 %v144_v0 }
   0x8   :  { %136 = vmatpush3.bf16.msra.mxu0 %v135_v7 }
   0xb   :  { %129 = vmatmul.mubr.msk.f32.vlgmr.msra.gmra.mrb[0].mxu0 %vm26_vm1, %v14_v8 }
  0xde   :  { %v96_v10 = vpop.f32.mrb[0].mxu0 }
  0xdf   :  { %v97_v11 = vadd.f32 %v112_v9, %v96_v10  ;;  %v130_v12 = vpop.f32.mrb[1].mxu0 }
  0xe1   :  { %v114_v13 = vmul.f32 -1.442695, %v97_v11 }
  0xe3   :  { %140 = vpow2.f32 %v114_v13 }
  0xed   :  { %v141_v14 = vpop.eup %140 }
  0xee   :  { %v103_v15 = vadd.f32 1.0, %v141_v14 }
  0xf0   :  { %142 = vrcp.f32 %v103_v15 }
  0xfa   :  { %v143_v16 = vpop.eup %142 }
  0xfb   :  { %107 = vst.msk [vmem:[%s191_s3] sm:$0xff] %vm106_vm2, %v143_v16 }

</bundles_post_ra>
